<compile_context>
chip_gen: v7x
topology: tpu7x:2x2x1
jax: 0.10.0
libtpu: 0.0.40
codegen_flags: <defaults>
</compile_context>

<pallas_src>
import math

import jax
import jax.numpy as jnp
from jax.experimental import pallas as pl
from jax.experimental.pallas import tpu as pltpu


# --------------------------------------------------------------------------- #
# Kernel
# --------------------------------------------------------------------------- #
def _swiglu_kernel(x_ref, w_ref, b_ref, o_ref, acc_ref):
    # x_ref:   [TM, TK]           (bf16 by default)
    # w_ref:   [TK, 2*TN]  = [W1_tile | W2_tile]
    # b_ref:   [1, 2*TN]   (f32)
    # o_ref:   [TM, TN]
    # acc_ref: [TM, 2*TN]  f32 VMEM scratch accumulator
    k = pl.program_id(2)

    @pl.when(k == 0)
    def _():
        acc_ref[...] = jnp.zeros_like(acc_ref)

    acc_ref[...] += jnp.dot(x_ref[...], w_ref[...],
                            preferred_element_type=jnp.float32)

    @pl.when(k == pl.num_programs(2) - 1)
    def _():
        tn = o_ref.shape[-1]
        h = acc_ref[...] + b_ref[...]          # f32 bias add
        h1 = h[:, :tn]                         # fc1 pre-activation (lane-tile aligned)
        h2 = h[:, tn:]                         # fc2 pre-activation
        # SiLU gate: sigmoid on the EUP, two muls on the VPU.
        o_ref[...] = (h1 * jax.nn.sigmoid(h1) * h2).astype(o_ref.dtype)


# --------------------------------------------------------------------------- #
# Sizing helpers
# --------------------------------------------------------------------------- #
def _round_up(a, b):
    return (a + b - 1) // b * b


def _vmem_need(tm, tn, tk, in_b, out_b):
    """Per-step VMEM bytes (double-buffered pipeline buffers + f32 accumulator)."""
    x_buf = 2 * tm * tk * in_b               # x tiles (double buffered)
    w_buf = 2 * tk * (2 * tn) * in_b         # fused-weight tiles (double buffered)
    b_buf = 2 * 8 * (2 * tn) * 4             # f32 bias (sublane-padded)
    o_buf = 2 * tm * tn * out_b              # output tiles (double buffered)
    acc = tm * (2 * tn) * 4                  # f32 accumulator scratch
    return x_buf + w_buf + b_buf + o_buf + acc


def _vmem_caps():
    """(physical VMEM per core, scoped-limit cap we are willing to request)."""
    try:
        cap = int(pltpu.get_tpu_info().vmem_capacity_bytes)
    except Exception:
        cap = 128 * 1024 * 1024
    if cap <= 64 * 1024 * 1024:
        # v7x-class: 64 MiB per TC -> leave headroom for epilogue temps /
        # compiler internal scratch.
        limit_cap = 40 * 1024 * 1024
    else:
        # v5e / v6e: 128 MiB physical -> use most of it.
        limit_cap = 96 * 1024 * 1024
    return cap, limit_cap


# --------------------------------------------------------------------------- #
# Prepared SwiGLU (weight fusion / padding / cast hoisted out of the hot path)
# --------------------------------------------------------------------------- #
class SwiGLUPallas:
    """SwiGLU with weights prepared once.

    w1, w2 : [in_dim, out_dim]   (transposed vs. nn.Linear's [out, in])
    b1, b2 : [out_dim]
    __call__(x): x [..., in_dim] -> [..., out_dim] = silu(x@w1+b1) * (x@w2+b2)

    compute_dtype: matmul operand dtype (default bf16; f32 accumulation always).
    vmem_budget_bytes: override the tile-selection budget (testing / tuning).
    """

    def __init__(self, w1, b1, w2, b2, *, tm=512, tn=512,
                 compute_dtype=jnp.bfloat16, vmem_budget_bytes=None):
        K, N = w1.shape
        assert w2.shape == (K, N) and b1.shape == (N,) and b2.shape == (N,)
        self.K, self.N = K, N
        self.compute_dtype = compute_dtype
        self.tm = max(8, (int(tm) // 8) * 8)

        _, self.limit_cap = _vmem_caps()
        budget_base = int(vmem_budget_bytes) if vmem_budget_bytes is not None \
            else self.limit_cap
        budget = int(budget_base * 0.9)

        in_b = jnp.dtype(compute_dtype if compute_dtype is not None
                         else w1.dtype).itemsize
        self.in_b = in_b
        out_b_est = 4  # size tiles for the worst case (f32 output)

        # ---- N tiling: TN always a multiple of 128 (lane-dense stores) -------
        TN = min(_round_up(N, 128), max(128, _round_up(int(tn), 128)))
        n_n = pl.cdiv(N, TN)
        N_pad = n_n * TN
        # NOTE (v7x megacore): prefer tn such that n_n >= 2 and even so the two
        # TensorCores split the N axis and each keeps only its own weight slab.

        # ---- K tiling: whole-K when it fits (weights resident across the M
        #      sweep), otherwise tile K and accumulate in f32 VMEM scratch. ----
        if _vmem_need(self.tm, TN, K, in_b, out_b_est) <= budget:
            TK, n_k, K_pad = K, 1, K
        else:
            TK = 256
            for cand in (4096, 2048, 1024, 512, 256):
                if cand < K and _vmem_need(self.tm, TN, cand, in_b,
                                           out_b_est) <= budget:
                    TK = cand
                    break
            n_k = pl.cdiv(K, TK)
            K_pad = n_k * TK

        self.TN, self.n_n, self.N_pad = TN, n_n, N_pad
        self.TK, self.n_k, self.K_pad = TK, n_k, K_pad

        # ---- fuse [W1 | W2] per N tile; pad N / K; cast once (hoisted) -------
        if N_pad != N:
            pad = N_pad - N
            w1 = jnp.pad(w1, ((0, 0), (0, pad)))
            w2 = jnp.pad(w2, ((0, 0), (0, pad)))
            b1 = jnp.pad(b1, ((0, pad),))
            b2 = jnp.pad(b2, ((0, pad),))
        # Fused-weight tile j holds [W1[:, j*TN:(j+1)*TN] | W2[:, j*TN:(j+1)*TN]].
        w_f = jnp.concatenate(
            [w1.reshape(K, n_n, TN), w2.reshape(K, n_n, TN)], axis=2
        ).reshape(K, n_n * 2 * TN)
        if K_pad != K:
            w_f = jnp.pad(w_f, ((0, K_pad - K), (0, 0)))   # zero rows: no-op in dot
        if compute_dtype is not None:
            w_f = w_f.astype(compute_dtype)
        b_f = jnp.concatenate(
            [b1.reshape(n_n, TN), b2.reshape(n_n, TN)], axis=1
        ).reshape(1, n_n * 2 * TN).astype(jnp.float32)

        self.w_f = w_f
        self.b_f = b_f

    def __call__(self, x):
        K, N = self.K, self.N
        assert x.shape[-1] == K, (x.shape, K)
        lead = x.shape[:-1]
        M = math.prod(lead)
        out_dtype = x.dtype

        x2d = x.reshape(M, K)
        if self.compute_dtype is not None:
            # Prefer producers that already emit bf16 activations; this cast is
            # a no-op in that case.
            x2d = x2d.astype(self.compute_dtype)
        if self.K_pad != K:
            x2d = jnp.pad(x2d, ((0, 0), (0, self.K_pad - K)))

        TN, n_n, N_pad = self.TN, self.n_n, self.N_pad
        TK, n_k, K_pad = self.TK, self.n_k, self.K_pad
        TM = M if M <= self.tm else self.tm
        n_m = pl.cdiv(M, TM)

        out_b = jnp.dtype(out_dtype).itemsize
        need = _vmem_need(TM, TN, TK, self.in_b, out_b)
        vmem_limit = int(min(self.limit_cap,
                             max(int(need * 1.25), 24 * 1024 * 1024)))

        cost = pl.CostEstimate(
            flops=2 * M * K_pad * (2 * N_pad),
            transcendentals=M * N_pad,
            bytes_accessed=(M * K_pad * self.in_b) * n_n            # x streamed n_n times
            + (K_pad * 2 * N_pad * self.in_b) * (n_m if n_k > 1 else 1)
            + 2 * N_pad * 4
            + M * N_pad * out_b,
        )

        out2d = pl.pallas_call(
            _swiglu_kernel,
            out_shape=jax.ShapeDtypeStruct((M, N_pad), out_dtype),
            grid_spec=pltpu.PrefetchScalarGridSpec(
                num_scalar_prefetch=0,
                # N tiles outermost (weight slab VMEM-resident across the whole
                # M sweep when n_k == 1), M tiles next, K reduction innermost.
                grid=(n_n, n_m, n_k),
                in_specs=[
                    pl.BlockSpec((TM, TK), lambda j, i, k: (i, k)),
                    pl.BlockSpec((TK, 2 * TN), lambda j, i, k: (k, j)),
                    pl.BlockSpec((1, 2 * TN), lambda j, i, k: (0, j)),
                ],
                out_specs=pl.BlockSpec((TM, TN), lambda j, i, k: (i, j)),
                scratch_shapes=[pltpu.VMEM((TM, 2 * TN), jnp.float32)],
            ),
            compiler_params=pltpu.CompilerParams(
                dimension_semantics=("parallel", "parallel", "arbitrary"),
                vmem_limit_bytes=vmem_limit,
            ),
            cost_estimate=cost,
        )(x2d, self.w_f, self.b_f)

        if N_pad != N:
            out2d = out2d[:, :N]
        return out2d.reshape(*lead, N)


def swiglu_pallas(x, w1, b1, w2, b2, **kwargs):
    """One-shot convenience wrapper. For the hot path, build SwiGLUPallas once
    so the weight fusion / padding / bf16 cast is hoisted out of every call."""
    return SwiGLUPallas(w1, b1, w2, b2, **kwargs)(x)


# --------------------------------------------------------------------------- #
# Reference
# --------------------------------------------------------------------------- #
def _ref_swiglu(x, w1, b1, w2, b2, compute_dtype=None):
    if compute_dtype is not None:
        x = x.astype(compute_dtype)
        w1 = w1.astype(compute_dtype)
        w2 = w2.astype(compute_dtype)
    h1 = jnp.einsum("...k,kn->...n", x, w1,
                    preferred_element_type=jnp.float32) + b1
    h2 = jnp.einsum("...k,kn->...n", x, w2,
                    preferred_element_type=jnp.float32) + b2
    return h1 * jax.nn.sigmoid(h1) * h2


# --------------------------------------------------------------------------- #
# Tests
# --------------------------------------------------------------------------- #
if __name__ == "__main__":
    key = jax.random.PRNGKey(0)

    # --- small shapes consistent with the module: B=2, S=8, in=32, out=64 ---
    B, S, IN_DIM, OUT_DIM = 2, 8, 32, 64
    kx, kw1, kb1, kw2, kb2, k_rest = jax.random.split(key, 6)
    x = jax.random.normal(kx, (B, S, IN_DIM), dtype=jnp.float32)
    w1 = jax.random.normal(kw1, (IN_DIM, OUT_DIM), dtype=jnp.float32) * 0.02
    b1 = jax.random.normal(kb1, (OUT_DIM,), dtype=jnp.float32) * 0.02
    w2 = jax.random.normal(kw2, (IN_DIM, OUT_DIM), dtype=jnp.float32) * 0.02
    b2 = jax.random.normal(kb2, (OUT_DIM,), dtype=jnp.float32) * 0.02

    # 1) f32-operand path: exact check against the f32 reference.
    out_f32 = swiglu_pallas(x, w1, b1, w2, b2, compute_dtype=jnp.float32)
    jax.block_until_ready(out_f32)
    ref_f32 = _ref_swiglu(x, w1, b1, w2, b2)
    assert out_f32.shape == (B, S, OUT_DIM)
    err = float(jnp.max(jnp.abs(out_f32 - ref_f32)))
    assert jnp.allclose(out_f32, ref_f32, atol=1e-4, rtol=1e-4), err

    # 2) default bf16-operand / f32-accumulate path (prepared weights, hoisted).
    fn_small = SwiGLUPallas(w1, b1, w2, b2)
    out_bf = fn_small(x)
    jax.block_until_ready(out_bf)
    ref_bf = _ref_swiglu(x, w1, b1, w2, b2, compute_dtype=jnp.bfloat16)
    err = float(jnp.max(jnp.abs(out_bf - ref_bf)))
    assert jnp.allclose(out_bf, ref_bf, atol=2e-3, rtol=2e-2), err

    # 3) ragged M (M % TM != 0) + N padded to a 128 multiple.
    B2, S2, K2, N2 = 1, 300, 256, 320      # M=300, N_pad=384
    ka, kb, kc, kd, ke, kf = jax.random.split(k_rest, 6)
    x_l = jax.random.normal(ka, (B2, S2, K2), dtype=jnp.float32)
    w1_l = jax.random.normal(kb, (K2, N2), dtype=jnp.float32) * 0.02
    b1_l = jax.random.normal(kc, (N2,), dtype=jnp.float32) * 0.1
    w2_l = jax.random.normal(kd, (K2, N2), dtype=jnp.float32) * 0.02
    b2_l = jax.random.normal(ke, (N2,), dtype=jnp.float32) * 0.1

    fn_l = SwiGLUPallas(w1_l, b1_l, w2_l, b2_l, tm=256)
    out_l = fn_l(x_l)
    jax.block_until_ready(out_l)
    ref_l = _ref_swiglu(x_l, w1_l, b1_l, w2_l, b2_l, compute_dtype=jnp.bfloat16)
    assert out_l.shape == (B2, S2, N2)
    err_l = float(jnp.max(jnp.abs(out_l - ref_l)))
    assert jnp.allclose(out_l, ref_l, atol=2e-3, rtol=2e-2), err_l

    # 4) force the K-tiled (n_k > 1) accumulator path via a tiny tile budget.
    B3, S3, K3, N3 = 1, 256, 1024, 256
    x_k = jax.random.normal(kf, (B3, S3, K3), dtype=jnp.float32)
    kg, kh, ki, kj = jax.random.split(jax.random.PRNGKey(1), 4)
    w1_k = jax.random.normal(kg, (K3, N3), dtype=jnp.float32) * 0.02
    b1_k = jax.random.normal(kh, (N3,), dtype=jnp.float32) * 0.1
    w2_k = jax.random.normal(ki, (K3, N3), dtype=jnp.float32) * 0.02
    b2_k = jax.random.normal(kj, (N3,), dtype=jnp.float32) * 0.1

    fn_k = SwiGLUPallas(w1_k, b1_k, w2_k, b2_k,
                        vmem_budget_bytes=2 * 1024 * 1024)   # forces n_k > 1
    assert fn_k.n_k > 1, fn_k.n_k
    out_k = fn_k(x_k)
    jax.block_until_ready(out_k)
    ref_k = _ref_swiglu(x_k, w1_k, b1_k, w2_k, b2_k, compute_dtype=jnp.bfloat16)
    assert out_k.shape == (B3, S3, N3)
    err_k = float(jnp.max(jnp.abs(out_k - ref_k)))
    assert jnp.allclose(out_k, ref_k, atol=2e-3, rtol=2e-2), err_k

    print("KERNEL_OK")
</pallas_src>

<mosaic_0001>
module attributes {stable_mosaic.version = 11 : i64} {
  func.func @_swiglu_kernel(%arg0: i32, %arg1: i32, %arg2: i32, %arg3: memref<16x32xf32, #tpu.memory_space<vmem>>, %arg4: memref<32x256xf32, #tpu.memory_space<vmem>>, %arg5: memref<1x256xf32, #tpu.memory_space<vmem>>, %arg6: memref<16x128xf32, #tpu.memory_space<vmem>>, %arg7: memref<16x256xf32, #tpu.memory_space<vmem>>) attributes {dimension_semantics = [#tpu.dimension_semantics<parallel>, #tpu.dimension_semantics<parallel>, #tpu.dimension_semantics<arbitrary>], iteration_bounds = array<i64: 1, 1, 1>, scalar_prefetch = 0 : i64, scratch_operands = 1 : i64, tpu.core_type = #tpu.core_type<tc>, window_params = [{transform_indices = @transform_0, window_bounds = array<i64: 16, 32>}, {transform_indices = @transform_1, window_bounds = array<i64: 32, 256>}, {transform_indices = @transform_2, window_bounds = array<i64: 1, 256>}, {transform_indices = @transform_3, window_bounds = array<i64: 16, 128>}]} {
    %c0_i32 = arith.constant 0 : i32
    %0 = arith.cmpi eq, %arg2, %c0_i32 : i32
    %1 = arith.extui %0 : i1 to i32
    %c0_i32_0 = arith.constant 0 : i32
    %2 = arith.cmpi ne, %1, %c0_i32_0 : i32
    scf.if %2 {
      %cst_10 = arith.constant 0.000000e+00 : f32
      %12 = vector.broadcast %cst_10 : f32 to vector<16x256xf32>
      %c0_11 = arith.constant 0 : index
      %c0_12 = arith.constant 0 : index
      %13 = vector.load %arg7[%c0_11, %c0_12] : memref<16x256xf32, #tpu.memory_space<vmem>>, vector<16x256xf32>
      tpu.vector_store %arg7[%c0_11, %c0_12], %12 {strides = array<i32>} : memref<16x256xf32, #tpu.memory_space<vmem>>, vector<16x256xf32>,
    } else {
    }
    %c0 = arith.constant 0 : index
    %c0_1 = arith.constant 0 : index
    %3 = vector.load %arg7[%c0, %c0_1] : memref<16x256xf32, #tpu.memory_space<vmem>>, vector<16x256xf32>
    %c0_2 = arith.constant 0 : index
    %c0_3 = arith.constant 0 : index
    %4 = vector.load %arg3[%c0_2, %c0_3] : memref<16x32xf32, #tpu.memory_space<vmem>>, vector<16x32xf32>
    %c0_4 = arith.constant 0 : index
    %c0_5 = arith.constant 0 : index
    %5 = vector.load %arg4[%c0_4, %c0_5] : memref<32x256xf32, #tpu.memory_space<vmem>>, vector<32x256xf32>
    %cst = arith.constant dense<0.000000e+00> : vector<16x256xf32>
    %6 = tpu.matmul %4, %5, %cst {dimension_numbers = #tpu.dot_dimension_numbers<[1], [0], [0], [1], [0, 0, 1, 1], [], []>} : vector<16x32xf32>, vector<32x256xf32>, vector<16x256xf32> -> vector<16x256xf32>
    %7 = arith.addf %3, %6 : vector<16x256xf32>
    %c0_6 = arith.constant 0 : index
    %c0_7 = arith.constant 0 : index
    %8 = vector.load %arg7[%c0_6, %c0_7] : memref<16x256xf32, #tpu.memory_space<vmem>>, vector<16x256xf32>
    tpu.vector_store %arg7[%c0_6, %c0_7], %7 {strides = array<i32>} : memref<16x256xf32, #tpu.memory_space<vmem>>, vector<16x256xf32>,
    %c0_i32_8 = arith.constant 0 : i32
    %9 = arith.cmpi eq, %arg2, %c0_i32_8 : i32
    %10 = arith.extui %9 : i1 to i32
    %c0_i32_9 = arith.constant 0 : i32
    %11 = arith.cmpi ne, %10, %c0_i32_9 : i32
    scf.if %11 {
      %c0_10 = arith.constant 0 : index
      %c0_11 = arith.constant 0 : index
      %12 = vector.load %arg7[%c0_10, %c0_11] : memref<16x256xf32, #tpu.memory_space<vmem>>, vector<16x256xf32>
      %c0_12 = arith.constant 0 : index
      %c0_13 = arith.constant 0 : index
      %13 = vector.load %arg5[%c0_12, %c0_13] : memref<1x256xf32, #tpu.memory_space<vmem>>, vector<1x256xf32>
      %14 = vector.broadcast %13 : vector<1x256xf32> to vector<16x256xf32>
      %15 = arith.addf %12, %14 : vector<16x256xf32>
      %16 = vector.extract_strided_slice %15 {offsets = [0, 0], sizes = [16, 128], strides = [1, 1]} : vector<16x256xf32> to vector<16x128xf32>
      %17 = vector.extract_strided_slice %15 {offsets = [0, 128], sizes = [16, 128], strides = [1, 1]} : vector<16x256xf32> to vector<16x128xf32>
      %18 = arith.negf %16 : vector<16x128xf32>
      %19 = math.exp %18 : vector<16x128xf32>
      %cst_14 = arith.constant 1.000000e+00 : f32
      %20 = vector.broadcast %cst_14 : f32 to vector<16x128xf32>
      %21 = arith.addf %20, %19 : vector<16x128xf32>
      %22 = arith.divf %20, %21 : vector<16x128xf32>
      %23 = arith.mulf %16, %22 : vector<16x128xf32>
      %24 = arith.mulf %23, %17 : vector<16x128xf32>
      %c0_15 = arith.constant 0 : index
      %c0_16 = arith.constant 0 : index
      %25 = vector.load %arg6[%c0_15, %c0_16] : memref<16x128xf32, #tpu.memory_space<vmem>>, vector<16x128xf32>
      tpu.vector_store %arg6[%c0_15, %c0_16], %24 {strides = array<i32>} : memref<16x128xf32, #tpu.memory_space<vmem>>, vector<16x128xf32>,
    } else {
    }
    return
  }
  func.func @transform_0(%arg0: i32, %arg1: i32, %arg2: i32) -> (i32, i32) {
    %c0_i32 = arith.constant 0 : i32
    return %arg1, %arg2 : i32, i32
  }
  func.func @transform_1(%arg0: i32, %arg1: i32, %arg2: i32) -> (i32, i32) {
    %c0_i32 = arith.constant 0 : i32
    return %arg2, %arg0 : i32, i32
  }
  func.func @transform_2(%arg0: i32, %arg1: i32, %arg2: i32) -> (i32, i32) {
    %c0_i32 = arith.constant 0 : i32
    %c0_i32_0 = arith.constant 0 : i32
    return %c0_i32, %arg0 : i32, i32
  }
  func.func @transform_3(%arg0: i32, %arg1: i32, %arg2: i32) -> (i32, i32) {
    %c0_i32 = arith.constant 0 : i32
    return %arg1, %arg0 : i32, i32
  }
}

</mosaic_0001>

<bundles_post_ra>
// kernel: tpu_custom_call.1
= control target key start
LH: loop header
LB: loop body
LE: loop exit
PB: predicated region body
PF: predicated region fallthrough
CT: control target
= control target key end

     0   :  { %8 = vsyncpa [#allocation4], 0  ;;  %s393_s0 = inlined_call_operand.hbm [shape: f32[16,32], index: 0, kind: input, shape index: {}]   ;;  %s394_s1 = inlined_call_operand.hbm [shape: f32[32,256], index: 1, kind: input, shape index: {}]   ;;  %s395_s2 = inlined_call_operand.vmem [shape: f32[1,256], index: 2, kind: input, shape index: {}]   ;;  %s396_s3 = inlined_call_operand.hbm [shape: f32[16,128], index: 3, kind: output, shape index: {}]  }
   0x1   :  { %9 = vsyncpa [#allocation7], 0 }
   0x2   :  { %10 = vsyncpa [#allocation5], 0  ;;  %s320_s12 = smov [#allocation3]   ;;  %s248_s16 = scalar_lea.hbm %s393_s0, 256 }
   0x3   :  { %s16_s13 = sshll.u32 %s320_s12, 4  ;;  %p249_p0 = scmp.ne.s32.totalorder %s393_s0, %s248_s16  ;;  %s17_s13 = int_to_ptr.vmem [resolvable:$true] %s16_s13 }
   0x4   :  { %p252_p1 = scmp.lt.u32.totalorder %s248_s16, %s393_s0 }
   0x6   :  { %p254_p2 = pnand %p252_p1, %p249_p0 }
   0x8   :  { %257 = shalt.err (!%p254_p2)
}
   0x9   :  { %s258_s21 = scalar_lea.vmem %s17_s13, 256  ;;  %p263_p4 = scmp.lt.s32.totalorder %s17_s13, %s17_s13 }
   0xa   :  { %p259_p3 = scmp.ne.s32.totalorder %s17_s13, %s258_s21  ;;  %p264_p5 = scmp.lt.s32.totalorder %s258_s21, %s258_s21 }
   0xc   :  { %p265_p6 = por %p264_p5, %p263_p4 }
   0xe   :  { %p266_p7 = pnand %p265_p6, %p259_p3 }
  0x10   :  { %269 = shalt.err (!%p266_p7)
}
  0x11   :  { %s321_s22 = smov 128   ;;  %s322_s23 = smov 8  }
  0x12   :  { %22 = dma.hbm_to_vmem [thread:$0]  %s393_s0, 256, %s17_s13, [#allocation4], %s321_s22, %s321_s22, %s322_s23  }
  0x13   :  { %s323_s26 = smov [#allocation6]   ;;  %s270_s30 = scalar_lea.hbm %s394_s1, 1024 }
  0x14   :  { %s28_s27 = sshll.u32 %s323_s26, 4  ;;  %p271_p8 = scmp.ne.s32.totalorder %s394_s1, %s270_s30  ;;  %s29_s27 = int_to_ptr.vmem [resolvable:$true] %s28_s27 }
  0x15   :  { %p274_p9 = scmp.lt.u32.totalorder %s270_s30, %s394_s1 }
  0x17   :  { %p276_p10 = pnand %p274_p9, %p271_p8 }
  0x19   :  { %279 = shalt.err (!%p276_p10)
}
  0x1a   :  { %s280_s8 = scalar_lea.vmem %s29_s27, 1024  ;;  %p285_p12 = scmp.lt.s32.totalorder %s29_s27, %s29_s27 }
  0x1b   :  { %p281_p11 = scmp.ne.s32.totalorder %s29_s27, %s280_s8  ;;  %p286_p13 = scmp.lt.s32.totalorder %s280_s8, %s280_s8 }
  0x1d   :  { %p287_p0 = por %p286_p13, %p285_p12 }
  0x1f   :  { %p288_p1 = pnand %p287_p0, %p281_p11 }
  0x21   :  { %291 = shalt.err (!%p288_p1)
}
  0x22   :  { %s324_s0 = smov 256   ;;  %s325_s9 = smov 16  }
  0x23   :  { %34 = dma.hbm_to_vmem [thread:$0]  %s394_s1, 1024, %s29_s27, [#allocation7], %s324_s0, %s324_s0, %s325_s9  }
  0x24   :  { %314 = dma.done.wait [#allocation4], 256  }
  0x25   :  { %315 = vsyncadd [#allocation4], 4294967040 }
  0x26   :  { %316 = dma.done.wait [#allocation7], 1024  }
  0x27   :  { %317 = vsyncadd [#allocation7], 4294966272  ;;  %v326_v0 = vmov 0.0   ;;  %v58_v1 = vld [vmem:[#allocation6 + $0x8] sm:$0xff]  ;;  %v60_v2 = vld [vmem:[#allocation6 + $0x18] sm:$0xff]  ;;  %vm65_vm0 = vcmask 261120   ;;  %v166_v15 = vlaneseq }
  0x28   :  { %136 = vmatprep.mubr.f32.mxu0 %v326_v0  ;;  %142 = vmatprep.mubr.f32.mxu1 %v326_v0  ;;  %v57_v3 = vld [vmem:[#allocation6] sm:$0xff]  ;;  %v220_v4 = vpack.c.bf16 %v60_v2, %v58_v1  ;;  %v59_v5 = vld [vmem:[#allocation6 + $0x10] sm:$0xff]  ;;  %v62_v6 = vld [vmem:[#allocation6 + $0x28] sm:$0xff] }
  0x29   :  { %v64_v7 = vld [vmem:[#allocation6 + $0x38] sm:$0xff]  ;;  %v222_v8 = vpack.c.bf16 %v59_v5, %v57_v3  ;;  %v61_v10 = vld [vmem:[#allocation6 + $0x20] sm:$0xff]  ;;  %v63_v11 = vld [vmem:[#allocation6 + $0x30] sm:$0xff]  ;;  %v167_v16 = vshrl.u32 %v166_v15, 7 }
  0x2a   :  { %v224_v9 = vpack.c.bf16 %v64_v7, %v62_v6  ;;  %221 = vmatprep.subr.bf16.mxu0 %v220_v4  ;;  %228 = vmatprep.subr.bf16.mxu1 %v220_v4  ;;  %v226_v12 = vpack.c.bf16 %v63_v11, %v61_v10  ;;  %v55_v13 = vld [vmem:[#allocation3] sm:$0xff]  ;;  %v56_v14 = vld [vmem:[#allocation3 + $0x8] sm:$0xff] }
  0x2b   :  { %223 = vmatpush1.bf16.msra.mxu0 %v222_v8  ;;  %230 = vmatpush1.bf16.msra.mxu1 %v222_v8  ;;  %v168_v17 = vsub.s32 0, %v167_v16  ;;  %v164_v18 = vld [vmem:[%s395_s2] sm:$0x3]  ;;  %v172_v32 = vsub.s32 1, %v167_v16  ;;  %s327_s2 = smov [#allocation8]  }
  0x2c   :  { %225 = vmatprep.subr.bf16.mxu0 %v224_v9  ;;  %229 = vmatprep.subr.bf16.mxu1 %v224_v9  ;;  %s203_s13 = sshll.u32 %s327_s2, 4  ;;  %s204_s13 = int_to_ptr.vmem [resolvable:$true] %s203_s13 }
  0x2d   :  { %v169_v19 = vrot.slane %v164_v18, %v168_v17  ;;  %v173_v33 = vrot.slane %v164_v18, %v172_v32  ;;  %s292_s14 = scalar_lea.vmem %s204_s13, 256  ;;  %p297_p3 = scmp.lt.s32.totalorder %s204_s13, %s204_s13 }
  0x2e   :  { %p293_p2 = scmp.ne.s32.totalorder %s204_s13, %s292_s14  ;;  %p298_p4 = scmp.lt.s32.totalorder %s292_s14, %s292_s14 }
  0x2f   :  { %227 = vmatpush1.bf16.msra.mxu0 %v226_v12  ;;  %231 = vmatpush1.bf16.msra.mxu1 %v226_v12 }
  0x30   :  { %p299_p5 = por %p298_p4, %p297_p3 }
  0x32   :  { %216 = vmatmul.mubr.msk.f32.vlgmr.msra.gmra.mrb[0].mxu0 %vm65_vm0, %v55_v13  ;;  %217 = vmatmul.mubr.msk.f32.vlgmr.msra.gmra.mrb[0].mxu1 %vm65_vm0, %v56_v14  ;;  %p300_p6 = pnand %p299_p5, %p293_p2 }
 0x105   :  { %v138_v20 = vpop.f32.mrb[0].mxu0  ;;  %v144_v21 = vpop.f32.mrb[0].mxu1 }
 0x106   :  { %v176_v22 = vadd.f32 %v169_v19, %v138_v20  ;;  %v178_v23 = vadd.f32 %v169_v19, %v144_v21  ;;  %v140_v24 = vpop.f32.mrb[1].mxu0  ;;  %v146_v25 = vpop.f32.mrb[1].mxu1 }
 0x107   :  { %v177_v37 = vadd.f32 %v173_v33, %v140_v24  ;;  %v179_v39 = vadd.f32 %v173_v33, %v146_v25 }
 0x108   :  { %v218_v26 = vmul.f32 -1.442695, %v176_v22  ;;  %v219_v27 = vmul.f32 -1.442695, %v178_v23 }
 0x10a   :  { %240 = vpow2.f32 %v218_v26 }
 0x10b   :  { %242 = vpow2.f32 %v219_v27 }
 0x114   :  { %v241_v28 = vpop.eup %240 }
 0x115   :  { %v243_v29 = vpop.eup %242  ;;  %v186_v30 = vadd.f32 1.0, %v241_v28 }
 0x116   :  { %v187_v31 = vadd.f32 1.0, %v243_v29 }
 0x117   :  { %244 = vrcp.f32 %v186_v30 }
 0x118   :  { %246 = vrcp.f32 %v187_v31 }
 0x121   :  { %v245_v34 = vpop.eup %244 }
 0x122   :  { %v247_v35 = vpop.eup %246  ;;  %v192_v36 = vmul.f32 %v245_v34, %v176_v22 }
 0x123   :  { %v193_v38 = vmul.f32 %v247_v35, %v178_v23 }
 0x124   :  { %v194_v40 = vmul.f32 %v192_v36, %v177_v37 }
 0x125   :  { %v195_v41 = vmul.f32 %v193_v38, %v179_v39 }
 0x126   :  { %196 = vst [vmem:[#allocation8] sm:$0xff] %v194_v40 }
 0x127   :  { %197 = vst [vmem:[#allocation8 + $0x8] sm:$0xff] %v195_v41 }
 0x128   :  { %303 = shalt.err (!%p300_p6)
}
 0x129   :  { %s304_s17 = scalar_lea.hbm %s396_s3, 256 }
 0x12a   :  { %p305_p7 = scmp.ne.s32.totalorder %s396_s3, %s304_s17  ;;  %p308_p8 = scmp.lt.u32.totalorder %s304_s17, %s396_s3 }
 0x12c   :  { %p310_p9 = pnand %p308_p8, %p305_p7 }
 0x12e   :  { %313 = shalt.err (!%p310_p9)
}
 0x12f   :  { %209 = dma.vmem_to_hbm [thread:$0]  %s204_s13, 256, %s396_s3, [#allocation5], %s321_s22, %s321_s22, %s322_s23  }
 0x130   :  { %318 = dma.done.wait [#allocation5], 256  }
 0x131   :  { %319 = vsyncadd [#allocation5], 4294967040 }
 0x132   :  { %213 = vsyncpa [#allocation4], 1 }
 0x133   :  { %214 = vsyncpa [#allocation7], 1 }
 0x134   :  { %215 = vsyncpa [#allocation5], 1 }

</bundles_post_ra>
